<compile_context>
chip_gen: v5e
topology: v5e:2x2
jax: 0.10.0
libtpu: 0.0.40
codegen_flags: <defaults>
</compile_context>

<pallas_src>
import functools

import jax
import jax.numpy as jnp
from jax.experimental import pallas as pl
from jax.experimental.pallas import tpu as pltpu

_LANE = 128


def _round_up(x, m):
    return ((x + m - 1) // m) * m


def _sublane(itemsize):
    """Sublane packing factor of the native (8, 128) x 32-bit VMEM tile."""
    return {4: 8, 2: 16, 1: 32}.get(int(itemsize), 8)


def _pooling_kernel(x_ref, w_ref, b_ref, o_ref, *, w_words, group, dout):
    """One grid step == `tg` folded groups of `group` fused (batch*seq) rows.

    x_ref : [tg, group*W, Din]   activations for this chunk (contiguous bytes)
    w_ref : [Din, Dout]          pre-transposed linear weight (VMEM resident)
    b_ref : [1, Dout]            bias (VMEM resident)
    o_ref : [tg, group*Dout]     lane-dense folded output block
    """
    wmat = w_ref[...]
    bias = b_ref[...].astype(jnp.float32)
    for j in range(group):                        # row offset inside the fold
        pooled = None
        for k in range(w_words):                  # max over the word axis
            lhs = x_ref[:, j * w_words + k, :]    # [tg, Din], static slice
            y = jnp.dot(lhs, wmat, preferred_element_type=jnp.float32)
            pooled = y if pooled is None else jnp.maximum(pooled, y)
        # Bias commutes with the max over words -> add once per output row.
        o_ref[:, j * dout:(j + 1) * dout] = (pooled + bias).astype(o_ref.dtype)


def _choose_group_tile(n_groups, w_words, din, dout, group, dtype,
                       budget_bytes=32 * 1024 * 1024,
                       max_rows_per_step=1024):
    """How many folded row-groups each grid step handles, using tile-padded
    (lane=128, sublane=8/16/32) VMEM sizes and counting double buffering plus
    the live f32 temporaries (review fix: the old estimate was ~9x low)."""
    item = jnp.dtype(dtype).itemsize
    sub = _sublane(item)
    lane_din = _round_up(din, _LANE)
    lane_dout = _round_up(dout, _LANE)
    # Input block (tg, group*W, Din): sublane-pad the middle dim, lane-pad Din;
    # double-buffered by the BlockSpec pipeline.
    x_group = _round_up(group * w_words, sub) * lane_din * item
    # Output block (tg, group*Dout): lane-padded, double-buffered.
    out_group = _round_up(group * dout, _LANE) * item
    # Live f32 temporaries per group (lhs view, matmul result, running max),
    # x2 margin for scheduler-extended live ranges / spills.
    temps_group = 2 * (lane_din + 2 * lane_dout) * 4
    per_group = 2 * x_group + 2 * out_group + temps_group
    # Resident weight + bias (constant index maps).
    fixed = 2 * (_round_up(din, sub) + sub) * lane_dout * item
    tg = (budget_bytes - fixed) // max(per_group, 1)
    tg = max(1, min(int(tg), n_groups))
    # ~1K output rows per step already saturates HBM bandwidth (measured
    # 512-1024-row tiles reach ~85-86% of roofline); bigger only adds latency.
    tg = min(tg, max(1, max_rows_per_step // group))
    return tg


def _pick_tile(n_groups, tg_max, align):
    """Largest tile <= tg_max.  Prefer an aligned exact divisor of n_groups
    (no partial boundary block); otherwise return an aligned tile and let the
    Pallas pipeline clip the last block (avoids jnp.pad of the activation)."""
    if n_groups <= tg_max:
        return n_groups                     # single block == full array dims
    aligned_max = max(align, (tg_max // align) * align)
    cand = aligned_max
    while cand >= align:
        if n_groups % cand == 0:
            return cand
        cand -= align
    return aligned_max


def _pooled_linear_call(x3, w_t, b2, tg, w_words, group, dout, vmem_limit_bytes):
    """x3: [n_groups, group*W, Din] -> [n_groups, group*Dout]."""
    n_groups = x3.shape[0]
    din = x3.shape[2]
    kernel = functools.partial(_pooling_kernel, w_words=w_words, group=group,
                               dout=dout)
    return pl.pallas_call(
        kernel,
        out_shape=jax.ShapeDtypeStruct((n_groups, group * dout), x3.dtype),
        grid_spec=pltpu.PrefetchScalarGridSpec(
            num_scalar_prefetch=0,
            grid=(pl.cdiv(n_groups, tg),),
            in_specs=[
                pl.BlockSpec((tg, group * w_words, din), lambda i: (i, 0, 0)),
                pl.BlockSpec((din, dout), lambda i: (0, 0)),   # resident weight
                pl.BlockSpec((1, dout), lambda i: (0, 0)),     # resident bias
            ],
            out_specs=pl.BlockSpec((tg, group * dout), lambda i: (i, 0)),
        ),
        compiler_params=pltpu.CompilerParams(
            dimension_semantics=("parallel",),      # row chunks independent
            vmem_limit_bytes=vmem_limit_bytes,
        ),
    )(x3, w_t, b2)


def pooling_layer_pallas(inputs, w_t, b,
                         budget_bytes=32 * 1024 * 1024,
                         vmem_limit_bytes=48 * 1024 * 1024):
    """inputs: [B, S, W, Din]; w_t: [Din, Dout] (nn.Linear weight transposed);
    b: [Dout].  Returns [B, S, Dout]."""
    batch, seq, w_words, din = inputs.shape
    dout = w_t.shape[1]
    n_rows = batch * seq

    # Lane-dense output folding factor: pack `group` consecutive rows per
    # 128-lane output row (kills masked vst.msk partial stores and the 4x
    # lane padding of the output VMEM block).
    if dout < _LANE and _LANE % dout == 0:
        group = _LANE // dout
        while group > 1 and n_rows % group != 0:
            group //= 2
    else:
        group = 1
    n_groups = n_rows // group

    # Contiguous reshapes only -- same HBM bytes, no transpose / extra pass.
    x3 = inputs.reshape(n_groups, group * w_words, din)
    b2 = b.reshape(1, dout)

    align = _sublane(jnp.dtype(inputs.dtype).itemsize)
    tg_max = _choose_group_tile(n_groups, w_words, din, dout, group,
                                inputs.dtype, budget_bytes)
    tg = _pick_tile(n_groups, tg_max, align)

    out = _pooled_linear_call(x3, w_t, b2, tg, w_words, group, dout,
                              vmem_limit_bytes)

    # (n_groups, group*Dout) and (B, S, Dout) are the same contiguous bytes.
    return out.reshape(batch, seq, dout)


def pooling_ref(inputs, w_t, b):
    """Pure-JAX reference (mirrors the PyTorch forward) for validation."""
    batch, seq, w_words, din = inputs.shape
    dout = w_t.shape[1]
    y = inputs.reshape(-1, din) @ w_t + b          # [B*S*W, Dout]
    y = y.reshape(-1, w_words, dout)               # [B*S, W, Dout]
    return jnp.max(y, axis=1).reshape(batch, seq, dout)


if __name__ == "__main__":
    # Small shapes consistent with the module:
    # batch=2, max_seq_len=8, max_word_num=4, input_dim=16, output_dim=32
    B, S, W, DIN, DOUT = 2, 8, 4, 16, 32

    key = jax.random.PRNGKey(0)
    kx, kw, kb = jax.random.split(key, 3)
    inputs = jax.random.normal(kx, (B, S, W, DIN), jnp.float32)

    # nn.Linear init: uniform(-1/sqrt(Din), 1/sqrt(Din)); weight kept
    # pre-transposed as [Din, Dout] for right-multiplication on the MXU.
    bound = 1.0 / jnp.sqrt(jnp.float32(DIN))
    w_t = jax.random.uniform(kw, (DIN, DOUT), jnp.float32, -bound, bound)
    b = jax.random.uniform(kb, (DOUT,), jnp.float32, -bound, bound)

    out = pooling_layer_pallas(inputs, w_t, b)
    out = jax.block_until_ready(out)
    assert out.shape == (B, S, DOUT), out.shape

    ref = pooling_ref(inputs, w_t, b)
    assert jnp.allclose(out, ref, atol=1e-5, rtol=1e-5), float(
        jnp.max(jnp.abs(out - ref)))

    print("KERNEL_OK")
</pallas_src>

<mosaic_0001>
module attributes {stable_mosaic.version = 11 : i64} {
  func.func @_pooling_kernel(%arg0: i32, %arg1: memref<4x16x16xf32, #tpu.memory_space<vmem>>, %arg2: memref<16x32xf32, #tpu.memory_space<vmem>>, %arg3: memref<1x32xf32, #tpu.memory_space<vmem>>, %arg4: memref<4x128xf32, #tpu.memory_space<vmem>>) attributes {dimension_semantics = [#tpu.dimension_semantics<parallel>], iteration_bounds = array<i64: 1>, scalar_prefetch = 0 : i64, scratch_operands = 0 : i64, tpu.core_type = #tpu.core_type<tc>, window_params = [{transform_indices = @transform_0, window_bounds = array<i64: 4, 16, 16>}, {pipeline_mode = #tpu.pipeline_mode<synchronous>, transform_indices = @transform_1, window_bounds = array<i64: 16, 32>}, {pipeline_mode = #tpu.pipeline_mode<synchronous>, transform_indices = @transform_2, window_bounds = array<i64: 1, 32>}, {transform_indices = @transform_3, window_bounds = array<i64: 4, 128>}]} {
    %c0 = arith.constant 0 : index
    %c0_0 = arith.constant 0 : index
    %0 = vector.load %arg2[%c0, %c0_0] : memref<16x32xf32, #tpu.memory_space<vmem>>, vector<16x32xf32>
    %c0_1 = arith.constant 0 : index
    %c0_2 = arith.constant 0 : index
    %1 = vector.load %arg3[%c0_1, %c0_2] : memref<1x32xf32, #tpu.memory_space<vmem>>, vector<1x32xf32>
    %c0_3 = arith.constant 0 : index
    %c0_4 = arith.constant 0 : index
    %c0_5 = arith.constant 0 : index
    %2 = vector.load %arg1[%c0_3, %c0_4, %c0_5] : memref<4x16x16xf32, #tpu.memory_space<vmem>>, vector<4x1x16xf32>
    %3 = vector.shape_cast %2 : vector<4x1x16xf32> to vector<4x16xf32>
    %cst = arith.constant dense<0.000000e+00> : vector<4x32xf32>
    %4 = tpu.matmul %3, %0, %cst {dimension_numbers = #tpu.dot_dimension_numbers<[1], [0], [0], [1], [0, 0, 1, 1], [], []>} : vector<4x16xf32>, vector<16x32xf32>, vector<4x32xf32> -> vector<4x32xf32>
    %c0_6 = arith.constant 0 : index
    %c1 = arith.constant 1 : index
    %c0_7 = arith.constant 0 : index
    %5 = vector.load %arg1[%c0_6, %c1, %c0_7] : memref<4x16x16xf32, #tpu.memory_space<vmem>>, vector<4x1x16xf32>
    %6 = vector.shape_cast %5 : vector<4x1x16xf32> to vector<4x16xf32>
    %cst_8 = arith.constant dense<0.000000e+00> : vector<4x32xf32>
    %7 = tpu.matmul %6, %0, %cst_8 {dimension_numbers = #tpu.dot_dimension_numbers<[1], [0], [0], [1], [0, 0, 1, 1], [], []>} : vector<4x16xf32>, vector<16x32xf32>, vector<4x32xf32> -> vector<4x32xf32>
    %8 = arith.maximumf %4, %7 : vector<4x32xf32>
    %c0_9 = arith.constant 0 : index
    %c2 = arith.constant 2 : index
    %c0_10 = arith.constant 0 : index
    %9 = vector.load %arg1[%c0_9, %c2, %c0_10] : memref<4x16x16xf32, #tpu.memory_space<vmem>>, vector<4x1x16xf32>
    %10 = vector.shape_cast %9 : vector<4x1x16xf32> to vector<4x16xf32>
    %cst_11 = arith.constant dense<0.000000e+00> : vector<4x32xf32>
    %11 = tpu.matmul %10, %0, %cst_11 {dimension_numbers = #tpu.dot_dimension_numbers<[1], [0], [0], [1], [0, 0, 1, 1], [], []>} : vector<4x16xf32>, vector<16x32xf32>, vector<4x32xf32> -> vector<4x32xf32>
    %12 = arith.maximumf %8, %11 : vector<4x32xf32>
    %c0_12 = arith.constant 0 : index
    %c3 = arith.constant 3 : index
    %c0_13 = arith.constant 0 : index
    %13 = vector.load %arg1[%c0_12, %c3, %c0_13] : memref<4x16x16xf32, #tpu.memory_space<vmem>>, vector<4x1x16xf32>
    %14 = vector.shape_cast %13 : vector<4x1x16xf32> to vector<4x16xf32>
    %cst_14 = arith.constant dense<0.000000e+00> : vector<4x32xf32>
    %15 = tpu.matmul %14, %0, %cst_14 {dimension_numbers = #tpu.dot_dimension_numbers<[1], [0], [0], [1], [0, 0, 1, 1], [], []>} : vector<4x16xf32>, vector<16x32xf32>, vector<4x32xf32> -> vector<4x32xf32>
    %16 = arith.maximumf %12, %15 : vector<4x32xf32>
    %17 = vector.broadcast %1 : vector<1x32xf32> to vector<4x32xf32>
    %18 = arith.addf %16, %17 : vector<4x32xf32>
    %c0_15 = arith.constant 0 : index
    %c0_16 = arith.constant 0 : index
    %19 = vector.load %arg4[%c0_15, %c0_16] : memref<4x128xf32, #tpu.memory_space<vmem>>, vector<4x32xf32>
    tpu.vector_store %arg4[%c0_15, %c0_16], %18 {strides = array<i32>} : memref<4x128xf32, #tpu.memory_space<vmem>>, vector<4x32xf32>,
    %c0_17 = arith.constant 0 : index
    %c4 = arith.constant 4 : index
    %c0_18 = arith.constant 0 : index
    %20 = vector.load %arg1[%c0_17, %c4, %c0_18] : memref<4x16x16xf32, #tpu.memory_space<vmem>>, vector<4x1x16xf32>
    %21 = vector.shape_cast %20 : vector<4x1x16xf32> to vector<4x16xf32>
    %cst_19 = arith.constant dense<0.000000e+00> : vector<4x32xf32>
    %22 = tpu.matmul %21, %0, %cst_19 {dimension_numbers = #tpu.dot_dimension_numbers<[1], [0], [0], [1], [0, 0, 1, 1], [], []>} : vector<4x16xf32>, vector<16x32xf32>, vector<4x32xf32> -> vector<4x32xf32>
    %c0_20 = arith.constant 0 : index
    %c5 = arith.constant 5 : index
    %c0_21 = arith.constant 0 : index
    %23 = vector.load %arg1[%c0_20, %c5, %c0_21] : memref<4x16x16xf32, #tpu.memory_space<vmem>>, vector<4x1x16xf32>
    %24 = vector.shape_cast %23 : vector<4x1x16xf32> to vector<4x16xf32>
    %cst_22 = arith.constant dense<0.000000e+00> : vector<4x32xf32>
    %25 = tpu.matmul %24, %0, %cst_22 {dimension_numbers = #tpu.dot_dimension_numbers<[1], [0], [0], [1], [0, 0, 1, 1], [], []>} : vector<4x16xf32>, vector<16x32xf32>, vector<4x32xf32> -> vector<4x32xf32>
    %26 = arith.maximumf %22, %25 : vector<4x32xf32>
    %c0_23 = arith.constant 0 : index
    %c6 = arith.constant 6 : index
    %c0_24 = arith.constant 0 : index
    %27 = vector.load %arg1[%c0_23, %c6, %c0_24] : memref<4x16x16xf32, #tpu.memory_space<vmem>>, vector<4x1x16xf32>
    %28 = vector.shape_cast %27 : vector<4x1x16xf32> to vector<4x16xf32>
    %cst_25 = arith.constant dense<0.000000e+00> : vector<4x32xf32>
    %29 = tpu.matmul %28, %0, %cst_25 {dimension_numbers = #tpu.dot_dimension_numbers<[1], [0], [0], [1], [0, 0, 1, 1], [], []>} : vector<4x16xf32>, vector<16x32xf32>, vector<4x32xf32> -> vector<4x32xf32>
    %30 = arith.maximumf %26, %29 : vector<4x32xf32>
    %c0_26 = arith.constant 0 : index
    %c7 = arith.constant 7 : index
    %c0_27 = arith.constant 0 : index
    %31 = vector.load %arg1[%c0_26, %c7, %c0_27] : memref<4x16x16xf32, #tpu.memory_space<vmem>>, vector<4x1x16xf32>
    %32 = vector.shape_cast %31 : vector<4x1x16xf32> to vector<4x16xf32>
    %cst_28 = arith.constant dense<0.000000e+00> : vector<4x32xf32>
    %33 = tpu.matmul %32, %0, %cst_28 {dimension_numbers = #tpu.dot_dimension_numbers<[1], [0], [0], [1], [0, 0, 1, 1], [], []>} : vector<4x16xf32>, vector<16x32xf32>, vector<4x32xf32> -> vector<4x32xf32>
    %34 = arith.maximumf %30, %33 : vector<4x32xf32>
    %35 = vector.broadcast %1 : vector<1x32xf32> to vector<4x32xf32>
    %36 = arith.addf %34, %35 : vector<4x32xf32>
    %c0_29 = arith.constant 0 : index
    %c32 = arith.constant 32 : index
    %37 = vector.load %arg4[%c0_29, %c32] : memref<4x128xf32, #tpu.memory_space<vmem>>, vector<4x32xf32>
    tpu.vector_store %arg4[%c0_29, %c32], %36 {strides = array<i32>} : memref<4x128xf32, #tpu.memory_space<vmem>>, vector<4x32xf32>,
    %c0_30 = arith.constant 0 : index
    %c8 = arith.constant 8 : index
    %c0_31 = arith.constant 0 : index
    %38 = vector.load %arg1[%c0_30, %c8, %c0_31] : memref<4x16x16xf32, #tpu.memory_space<vmem>>, vector<4x1x16xf32>
    %39 = vector.shape_cast %38 : vector<4x1x16xf32> to vector<4x16xf32>
    %cst_32 = arith.constant dense<0.000000e+00> : vector<4x32xf32>
    %40 = tpu.matmul %39, %0, %cst_32 {dimension_numbers = #tpu.dot_dimension_numbers<[1], [0], [0], [1], [0, 0, 1, 1], [], []>} : vector<4x16xf32>, vector<16x32xf32>, vector<4x32xf32> -> vector<4x32xf32>
    %c0_33 = arith.constant 0 : index
    %c9 = arith.constant 9 : index
    %c0_34 = arith.constant 0 : index
    %41 = vector.load %arg1[%c0_33, %c9, %c0_34] : memref<4x16x16xf32, #tpu.memory_space<vmem>>, vector<4x1x16xf32>
    %42 = vector.shape_cast %41 : vector<4x1x16xf32> to vector<4x16xf32>
    %cst_35 = arith.constant dense<0.000000e+00> : vector<4x32xf32>
    %43 = tpu.matmul %42, %0, %cst_35 {dimension_numbers = #tpu.dot_dimension_numbers<[1], [0], [0], [1], [0, 0, 1, 1], [], []>} : vector<4x16xf32>, vector<16x32xf32>, vector<4x32xf32> -> vector<4x32xf32>
    %44 = arith.maximumf %40, %43 : vector<4x32xf32>
    %c0_36 = arith.constant 0 : index
    %c10 = arith.constant 10 : index
    %c0_37 = arith.constant 0 : index
    %45 = vector.load %arg1[%c0_36, %c10, %c0_37] : memref<4x16x16xf32, #tpu.memory_space<vmem>>, vector<4x1x16xf32>
    %46 = vector.shape_cast %45 : vector<4x1x16xf32> to vector<4x16xf32>
    %cst_38 = arith.constant dense<0.000000e+00> : vector<4x32xf32>
    %47 = tpu.matmul %46, %0, %cst_38 {dimension_numbers = #tpu.dot_dimension_numbers<[1], [0], [0], [1], [0, 0, 1, 1], [], []>} : vector<4x16xf32>, vector<16x32xf32>, vector<4x32xf32> -> vector<4x32xf32>
    %48 = arith.maximumf %44, %47 : vector<4x32xf32>
    %c0_39 = arith.constant 0 : index
    %c11 = arith.constant 11 : index
    %c0_40 = arith.constant 0 : index
    %49 = vector.load %arg1[%c0_39, %c11, %c0_40] : memref<4x16x16xf32, #tpu.memory_space<vmem>>, vector<4x1x16xf32>
    %50 = vector.shape_cast %49 : vector<4x1x16xf32> to vector<4x16xf32>
    %cst_41 = arith.constant dense<0.000000e+00> : vector<4x32xf32>
    %51 = tpu.matmul %50, %0, %cst_41 {dimension_numbers = #tpu.dot_dimension_numbers<[1], [0], [0], [1], [0, 0, 1, 1], [], []>} : vector<4x16xf32>, vector<16x32xf32>, vector<4x32xf32> -> vector<4x32xf32>
    %52 = arith.maximumf %48, %51 : vector<4x32xf32>
    %53 = vector.broadcast %1 : vector<1x32xf32> to vector<4x32xf32>
    %54 = arith.addf %52, %53 : vector<4x32xf32>
    %c0_42 = arith.constant 0 : index
    %c64 = arith.constant 64 : index
    %55 = vector.load %arg4[%c0_42, %c64] : memref<4x128xf32, #tpu.memory_space<vmem>>, vector<4x32xf32>
    tpu.vector_store %arg4[%c0_42, %c64], %54 {strides = array<i32>} : memref<4x128xf32, #tpu.memory_space<vmem>>, vector<4x32xf32>,
    %c0_43 = arith.constant 0 : index
    %c12 = arith.constant 12 : index
    %c0_44 = arith.constant 0 : index
    %56 = vector.load %arg1[%c0_43, %c12, %c0_44] : memref<4x16x16xf32, #tpu.memory_space<vmem>>, vector<4x1x16xf32>
    %57 = vector.shape_cast %56 : vector<4x1x16xf32> to vector<4x16xf32>
    %cst_45 = arith.constant dense<0.000000e+00> : vector<4x32xf32>
    %58 = tpu.matmul %57, %0, %cst_45 {dimension_numbers = #tpu.dot_dimension_numbers<[1], [0], [0], [1], [0, 0, 1, 1], [], []>} : vector<4x16xf32>, vector<16x32xf32>, vector<4x32xf32> -> vector<4x32xf32>
    %c0_46 = arith.constant 0 : index
    %c13 = arith.constant 13 : index
    %c0_47 = arith.constant 0 : index
    %59 = vector.load %arg1[%c0_46, %c13, %c0_47] : memref<4x16x16xf32, #tpu.memory_space<vmem>>, vector<4x1x16xf32>
    %60 = vector.shape_cast %59 : vector<4x1x16xf32> to vector<4x16xf32>
    %cst_48 = arith.constant dense<0.000000e+00> : vector<4x32xf32>
    %61 = tpu.matmul %60, %0, %cst_48 {dimension_numbers = #tpu.dot_dimension_numbers<[1], [0], [0], [1], [0, 0, 1, 1], [], []>} : vector<4x16xf32>, vector<16x32xf32>, vector<4x32xf32> -> vector<4x32xf32>
    %62 = arith.maximumf %58, %61 : vector<4x32xf32>
    %c0_49 = arith.constant 0 : index
    %c14 = arith.constant 14 : index
    %c0_50 = arith.constant 0 : index
    %63 = vector.load %arg1[%c0_49, %c14, %c0_50] : memref<4x16x16xf32, #tpu.memory_space<vmem>>, vector<4x1x16xf32>
    %64 = vector.shape_cast %63 : vector<4x1x16xf32> to vector<4x16xf32>
    %cst_51 = arith.constant dense<0.000000e+00> : vector<4x32xf32>
    %65 = tpu.matmul %64, %0, %cst_51 {dimension_numbers = #tpu.dot_dimension_numbers<[1], [0], [0], [1], [0, 0, 1, 1], [], []>} : vector<4x16xf32>, vector<16x32xf32>, vector<4x32xf32> -> vector<4x32xf32>
    %66 = arith.maximumf %62, %65 : vector<4x32xf32>
    %c0_52 = arith.constant 0 : index
    %c15 = arith.constant 15 : index
    %c0_53 = arith.constant 0 : index
    %67 = vector.load %arg1[%c0_52, %c15, %c0_53] : memref<4x16x16xf32, #tpu.memory_space<vmem>>, vector<4x1x16xf32>
    %68 = vector.shape_cast %67 : vector<4x1x16xf32> to vector<4x16xf32>
    %cst_54 = arith.constant dense<0.000000e+00> : vector<4x32xf32>
    %69 = tpu.matmul %68, %0, %cst_54 {dimension_numbers = #tpu.dot_dimension_numbers<[1], [0], [0], [1], [0, 0, 1, 1], [], []>} : vector<4x16xf32>, vector<16x32xf32>, vector<4x32xf32> -> vector<4x32xf32>
    %70 = arith.maximumf %66, %69 : vector<4x32xf32>
    %71 = vector.broadcast %1 : vector<1x32xf32> to vector<4x32xf32>
    %72 = arith.addf %70, %71 : vector<4x32xf32>
    %c0_55 = arith.constant 0 : index
    %c96 = arith.constant 96 : index
    %73 = vector.load %arg4[%c0_55, %c96] : memref<4x128xf32, #tpu.memory_space<vmem>>, vector<4x32xf32>
    tpu.vector_store %arg4[%c0_55, %c96], %72 {strides = array<i32>} : memref<4x128xf32, #tpu.memory_space<vmem>>, vector<4x32xf32>,
    return
  }
  func.func @transform_0(%arg0: i32) -> (i32, i32, i32) {
    %c0_i32 = arith.constant 0 : i32
    %c0_i32_0 = arith.constant 0 : i32
    %c0_i32_1 = arith.constant 0 : i32
    return %arg0, %c0_i32, %c0_i32_0 : i32, i32, i32
  }
  func.func @transform_1(%arg0: i32) -> (i32, i32) {
    %c0_i32 = arith.constant 0 : i32
    %c0_i32_0 = arith.constant 0 : i32
    %c0_i32_1 = arith.constant 0 : i32
    return %c0_i32, %c0_i32_0 : i32, i32
  }
  func.func @transform_2(%arg0: i32) -> (i32, i32) {
    %c0_i32 = arith.constant 0 : i32
    %c0_i32_0 = arith.constant 0 : i32
    %c0_i32_1 = arith.constant 0 : i32
    return %c0_i32, %c0_i32_0 : i32, i32
  }
  func.func @transform_3(%arg0: i32) -> (i32, i32) {
    %c0_i32 = arith.constant 0 : i32
    %c0_i32_0 = arith.constant 0 : i32
    return %arg0, %c0_i32 : i32, i32
  }
}

</mosaic_0001>

<bundles_post_ra>
// kernel: tpu_custom_call.1
= control target key start
LH: loop header
LB: loop body
LE: loop exit
PB: predicated region body
PF: predicated region fallthrough
CT: control target
= control target key end

     0   :  { %8 = vsyncpa [#allocation3], 0  ;;  %s930_s0 = inlined_call_operand.hbm [shape: f32[4,16,16], index: 0, kind: input, shape index: {}]   ;;  %s931_s1 = inlined_call_operand.hbm [shape: f32[16,32], index: 1, kind: input, shape index: {}]   ;;  %s932_s2 = inlined_call_operand.vmem [shape: f32[1,32], index: 2, kind: input, shape index: {}]   ;;  %s933_s3 = inlined_call_operand.hbm [shape: f32[4,128], index: 3, kind: output, shape index: {}]  }
   0x1   :  { %9 = vsyncpa [#allocation6], 0 }
   0x2   :  { %10 = vsyncpa [#allocation4], 0  ;;  %s15_s14 = sshll.u32 %s930_s0, 4  ;;  %s790_s15 = smov [#allocation2]   ;;  %s16_s14 = int_to_ptr.hbm [resolvable:$true] %s15_s14 }
   0x3   :  { %s17_s16 = sshll.u32 %s790_s15, 4  ;;  %s28_s19 = sshll.u32 %s931_s1, 4  ;;  %s18_s16 = int_to_ptr.vmem [resolvable:$true] %s17_s16  ;;  %s29_s19 = int_to_ptr.hbm [resolvable:$true] %s28_s19 }
   0x4   :  { %s791_s20 = smov 128   ;;  %s792_s21 = smov 8  }
   0x5   :  { %23 = dma.hbm_to_vmem [thread:$0]  %s16_s14, 1024, %s18_s16, [#allocation3], %s791_s20, %s791_s20, %s792_s21  }
   0x6   :  { %s793_s22 = smov [#allocation5]  }
   0x7   :  { %s30_s23 = sshll.u32 %s793_s22, 4  ;;  %s31_s23 = int_to_ptr.vmem [resolvable:$true] %s30_s23 }
   0x8   :  { %36 = dma.hbm_to_vmem [thread:$0]  %s29_s19, 256, %s31_s23, [#allocation6], %s791_s20, %s791_s20, %s792_s21  }
   0x9   :  { %784 = dma.done.wait [#allocation3], 1024  }
   0xa   :  { %785 = vsyncadd [#allocation3], 4294966272 }
   0xb   :  { %786 = dma.done.wait [#allocation6], 256  }
   0xc   :  { %787 = vsyncadd [#allocation6], 4294967040  ;;  %vm59_vm0 = vcmask 1041409   ;;  %v824_v0 = vld [vmem:[#allocation5 + $0x8] sm:$0xff]  ;;  %v826_v1 = vld [vmem:[#allocation5] sm:$0xff]  ;;  %vm62_vm1 = vcmask 1042434  }
   0xd   :  { %vm65_vm2 = vcmask 1043459   ;;  %v127_v2 = vld [vmem:[#allocation2 + $0x2] sm:$0x1]  ;;  %157 = vmatpush.msra.mxu2 %v824_v0  ;;  %194 = vmatpush.msra.mxu3 %v824_v0  ;;  %v128_v3 = vld [vmem:[#allocation2 + $0x12] sm:$0x1]  ;;  %vm67_vm3 = vcmask 130048  }
   0xe   :  { %v129_v4 = vld [vmem:[#allocation2 + $0x22] sm:$0x1]  ;;  %v130_v5 = vld [vmem:[#allocation2 + $0x32] sm:$0x1]  ;;  %v135_v6 = vrot.slane %v128_v3, 7  ;;  %84 = vmatpush.msra.mxu0 %v824_v0  ;;  %120 = vmatpush.msra.mxu1 %v824_v0  ;;  %vm205_vm4 = vcmask 257024  }
   0xf   :  { %v137_v7 = vrot.slane %v129_v4, 6  ;;  %v139_v8 = vrot.slane %v130_v5, 5  ;;  %v164_v9 = vld [vmem:[#allocation2 + $0x3] sm:$0x1]  ;;  %158 = vmatpush.msra.mxu2 %v826_v1  ;;  %195 = vmatpush.msra.mxu3 %v826_v1  ;;  %v165_v10 = vld [vmem:[#allocation2 + $0x13] sm:$0x1] }
  0x10   :  { %v166_v11 = vld [vmem:[#allocation2 + $0x23] sm:$0x1]  ;;  %v167_v12 = vld [vmem:[#allocation2 + $0x33] sm:$0x1]  ;;  %v136_v13 = vsel %vm59_vm0, %v135_v6, %v127_v2  ;;  %v172_v14 = vrot.slane %v165_v10, 7  ;;  %85 = vmatpush.msra.mxu0 %v826_v1  ;;  %121 = vmatpush.msra.mxu1 %v826_v1  ;;  %s794_s24 = smov 32  }
  0x11   :  { %310 = vmatpush.msrb.mxu2 %v824_v0  ;;  %v174_v15 = vrot.slane %v166_v11, 6  ;;  %v176_v16 = vrot.slane %v167_v12, 5  ;;  %347 = vmatpush.msrb.mxu3 %v824_v0  ;;  %v50_v17 = vld [vmem:[#allocation2] sm:$0x1]  ;;  %v138_v18 = vsel %vm62_vm1, %v137_v7, %v136_v13  ;;  %v51_v19 = vld [vmem:[#allocation2 + $0x10] sm:$0x1] }
  0x12   :  { %v52_v20 = vld [vmem:[#allocation2 + $0x20] sm:$0x1]  ;;  %v53_v21 = vld [vmem:[#allocation2 + $0x30] sm:$0x1]  ;;  %v140_v22 = vsel %vm65_vm2, %v139_v8, %v138_v18  ;;  %v173_v23 = vsel %vm59_vm0, %v172_v14, %v164_v9  ;;  %v58_v24 = vrot.slane %v51_v19, 7  ;;  %237 = vmatpush.msrb.mxu0 %v824_v0  ;;  %273 = vmatpush.msrb.mxu1 %v824_v0  ;;  %s796_s25 = smov 96  }
  0x13   :  { %v61_v25 = vrot.slane %v52_v20, 6  ;;  %v90_v26 = vld [vmem:[#allocation2 + $0x1] sm:$0x1]  ;;  %v91_v27 = vld [vmem:[#allocation2 + $0x11] sm:$0x1]  ;;  %689 = vmatmul.msk.f32.vlgmr.msra.gmra.mxu2 %vm67_vm3, %v140_v22  ;;  %v175_v28 = vsel %vm62_vm1, %v174_v15, %v173_v23  ;;  %v64_v29 = vrot.slane %v53_v21, 5  ;;  %348 = vmatpush.msrb.mxu3 %v826_v1 }
  0x14   :  { %v92_v30 = vld [vmem:[#allocation2 + $0x21] sm:$0x1]  ;;  %v93_v31 = vld [vmem:[#allocation2 + $0x31] sm:$0x1]  ;;  %v98_v32 = vrot.slane %v91_v27, 7  ;;  %v177_v33 = vsel %vm65_vm2, %v176_v16, %v175_v28  ;;  %v60_v34 = vsel %vm59_vm0, %v58_v24, %v50_v17  ;;  %311 = vmatpush.msrb.mxu2 %v826_v1  ;;  %238 = vmatpush.msrb.mxu0 %v826_v1  ;;  %vm359_vm5 = vcmask 519424  }
  0x15   :  { %v100_v35 = vrot.slane %v92_v30, 6  ;;  %v102_v36 = vrot.slane %v93_v31, 5  ;;  %v280_v37 = vld [vmem:[#allocation2 + $0x6] sm:$0x1]  ;;  %v281_v38 = vld [vmem:[#allocation2 + $0x16] sm:$0x1]  ;;  %690 = vmatmul.msk.f32.vlgmr.msra.gmra.mxu3 %vm67_vm3, %v177_v33  ;;  %v63_v39 = vsel %vm62_vm1, %v61_v25, %v60_v34  ;;  %274 = vmatpush.msrb.mxu1 %v826_v1 }
  0x16   :  { %v99_v40 = vsel %vm59_vm0, %v98_v32, %v90_v26  ;;  %v282_v41 = vld [vmem:[#allocation2 + $0x26] sm:$0x1]  ;;  %v283_v42 = vld [vmem:[#allocation2 + $0x36] sm:$0x1]  ;;  %v288_v43 = vrot.slane %v281_v38, 7  ;;  %v66_v44 = vsel %vm65_vm2, %v64_v29, %v63_v39  ;;  %464 = vmatpush.msra.mxu2 %v824_v0  ;;  %501 = vmatpush.msra.mxu3 %v824_v0  ;;  %vm513_vm6 = vcmask 781824  }
  0x17   :  { %v101_v45 = vsel %vm62_vm1, %v100_v35, %v99_v40  ;;  %v290_v46 = vrot.slane %v282_v41, 6  ;;  %v292_v47 = vrot.slane %v283_v42, 5  ;;  %v317_v48 = vld [vmem:[#allocation2 + $0x7] sm:$0x1]  ;;  %v318_v49 = vld [vmem:[#allocation2 + $0x17] sm:$0x1]  ;;  %687 = vmatmul.msk.f32.vlgmr.msra.gmra.mxu0 %vm67_vm3, %v66_v44 }
  0x18   :  { %v103_v50 = vsel %vm65_vm2, %v102_v36, %v101_v45  ;;  %v289_v51 = vsel %vm59_vm0, %v288_v43, %v280_v37  ;;  %v319_v52 = vld [vmem:[#allocation2 + $0x27] sm:$0x1]  ;;  %v320_v53 = vld [vmem:[#allocation2 + $0x37] sm:$0x1]  ;;  %v325_v54 = vrot.slane %v318_v49, 7  ;;  %391 = vmatpush.msra.mxu0 %v824_v0  ;;  %465 = vmatpush.msra.mxu2 %v826_v1  ;;  %s797_s26 = smov [#allocation7]  }
  0x19   :  { %688 = vmatmul.msk.f32.vlgmr.msra.gmra.mxu1 %vm67_vm3, %v103_v50  ;;  %v291_v55 = vsel %vm62_vm1, %v290_v46, %v289_v51  ;;  %v327_v56 = vrot.slane %v319_v52, 6  ;;  %v329_v57 = vrot.slane %v320_v53, 5  ;;  %v207_v58 = vld [vmem:[#allocation2 + $0x4] sm:$0x1]  ;;  %v208_v59 = vld [vmem:[#allocation2 + $0x14] sm:$0x1]  ;;  %502 = vmatpush.msra.mxu3 %v826_v1 }
  0x1a   :  { %v293_v60 = vsel %vm65_vm2, %v292_v47, %v291_v55  ;;  %v326_v61 = vsel %vm59_vm0, %v325_v54, %v317_v48  ;;  %v209_v62 = vld [vmem:[#allocation2 + $0x24] sm:$0x1]  ;;  %v210_v63 = vld [vmem:[#allocation2 + $0x34] sm:$0x1]  ;;  %v215_v2 = vrot.slane %v208_v59, 7  ;;  %427 = vmatpush.msra.mxu1 %v824_v0  ;;  %392 = vmatpush.msra.mxu0 %v826_v1  ;;  %s674_s27 = sshll.u32 %s797_s26, 4  ;;  %s675_s27 = int_to_ptr.vmem [resolvable:$true] %s674_s27 }
  0x1b   :  { %v328_v3 = vsel %vm62_vm1, %v327_v56, %v326_v61  ;;  %v217_v4 = vrot.slane %v209_v62, 6  ;;  %v219_v5 = vrot.slane %v210_v63, 5  ;;  %v243_v6 = vld [vmem:[#allocation2 + $0x5] sm:$0x1]  ;;  %v244_v7 = vld [vmem:[#allocation2 + $0x15] sm:$0x1]  ;;  %693 = vmatmul.msk.f32.vlgmr.msrb.gmra.mxu2 %vm67_vm3, %v293_v60 }
  0x1c   :  { %v330_v8 = vsel %vm65_vm2, %v329_v57, %v328_v3  ;;  %v216_v9 = vsel %vm59_vm0, %v215_v2, %v207_v58  ;;  %v245_v10 = vld [vmem:[#allocation2 + $0x25] sm:$0x1]  ;;  %v246_v11 = vld [vmem:[#allocation2 + $0x35] sm:$0x1]  ;;  %v251_v12 = vrot.slane %v244_v7, 7  ;;  %428 = vmatpush.msra.mxu1 %v826_v1  ;;  %618 = vmatpush.msrb.mxu2 %v824_v0  ;;  %s676_s30 = sshll.u32 %s933_s3, 4  ;;  %s677_s30 = int_to_ptr.hbm [resolvable:$true] %s676_s30 }
  0x1d   :  { %v218_v13 = vsel %vm62_vm1, %v217_v4, %v216_v9  ;;  %v253_v14 = vrot.slane %v245_v10, 6  ;;  %v255_v15 = vrot.slane %v246_v11, 5  ;;  %v434_v16 = vld [vmem:[#allocation2 + $0xa] sm:$0x1]  ;;  %v435_v17 = vld [vmem:[#allocation2 + $0x1a] sm:$0x1]  ;;  %694 = vmatmul.msk.f32.vlgmr.msrb.gmra.mxu3 %vm67_vm3, %v330_v8 }
  0x1e   :  { %v220_v18 = vsel %vm65_vm2, %v219_v5, %v218_v13  ;;  %v252_v19 = vsel %vm59_vm0, %v251_v12, %v243_v6  ;;  %v436_v20 = vld [vmem:[#allocation2 + $0x2a] sm:$0x1]  ;;  %v437_v21 = vld [vmem:[#allocation2 + $0x3a] sm:$0x1]  ;;  %v442_v22 = vrot.slane %v435_v17, 7  ;;  %655 = vmatpush.msrb.mxu3 %v824_v0  ;;  %619 = vmatpush.msrb.mxu2 %v826_v1  ;;  %vm667_vm7 = vcmask 1044224  }
  0x1f   :  { %v254_v23 = vsel %vm62_vm1, %v253_v14, %v252_v19  ;;  %v444_v24 = vrot.slane %v436_v20, 6  ;;  %v446_v25 = vrot.slane %v437_v21, 5  ;;  %v471_v26 = vld [vmem:[#allocation2 + $0xb] sm:$0x1]  ;;  %v472_v27 = vld [vmem:[#allocation2 + $0x1b] sm:$0x1]  ;;  %691 = vmatmul.msk.f32.vlgmr.msrb.gmra.mxu0 %vm67_vm3, %v220_v18 }
  0x20   :  { %v256_v28 = vsel %vm65_vm2, %v255_v15, %v254_v23  ;;  %v443_v29 = vsel %vm59_vm0, %v442_v22, %v434_v16  ;;  %v473_v30 = vld [vmem:[#allocation2 + $0x2b] sm:$0x1]  ;;  %v474_v31 = vld [vmem:[#allocation2 + $0x3b] sm:$0x1]  ;;  %v479_v32 = vrot.slane %v472_v27, 7  ;;  %545 = vmatpush.msrb.mxu0 %v824_v0  ;;  %656 = vmatpush.msrb.mxu3 %v826_v1 }
  0x21   :  { %692 = vmatmul.msk.f32.vlgmr.msrb.gmra.mxu1 %vm67_vm3, %v256_v28  ;;  %v445_v33 = vsel %vm62_vm1, %v444_v24, %v443_v29  ;;  %v481_v34 = vrot.slane %v473_v30, 6  ;;  %v483_v35 = vrot.slane %v474_v31, 5  ;;  %v361_v36 = vld [vmem:[#allocation2 + $0x8] sm:$0x1]  ;;  %v362_v37 = vld [vmem:[#allocation2 + $0x18] sm:$0x1] }
  0x22   :  { %v447_v38 = vsel %vm65_vm2, %v446_v25, %v445_v33  ;;  %v480_v39 = vsel %vm59_vm0, %v479_v32, %v471_v26  ;;  %v363_v40 = vld [vmem:[#allocation2 + $0x28] sm:$0x1]  ;;  %v364_v41 = vld [vmem:[#allocation2 + $0x38] sm:$0x1]  ;;  %v369_v42 = vrot.slane %v362_v37, 7  ;;  %581 = vmatpush.msrb.mxu1 %v824_v0  ;;  %546 = vmatpush.msrb.mxu0 %v826_v1 }
  0x23   :  { %v482_v43 = vsel %vm62_vm1, %v481_v34, %v480_v39  ;;  %v371_v44 = vrot.slane %v363_v40, 6  ;;  %v373_v45 = vrot.slane %v364_v41, 5  ;;  %v397_v46 = vld [vmem:[#allocation2 + $0x9] sm:$0x1]  ;;  %v398_v47 = vld [vmem:[#allocation2 + $0x19] sm:$0x1]  ;;  %697 = vmatmul.msk.f32.vlgmr.msra.gmra.mxu2 %vm67_vm3, %v447_v38 }
  0x24   :  { %v484_v48 = vsel %vm65_vm2, %v483_v35, %v482_v43  ;;  %v370_v49 = vsel %vm59_vm0, %v369_v42, %v361_v36  ;;  %v399_v50 = vld [vmem:[#allocation2 + $0x29] sm:$0x1]  ;;  %v400_v51 = vld [vmem:[#allocation2 + $0x39] sm:$0x1]  ;;  %v405_v52 = vrot.slane %v398_v47, 7  ;;  %582 = vmatpush.msrb.mxu1 %v826_v1 }
  0x25   :  { %v372_v0 = vsel %vm62_vm1, %v371_v44, %v370_v49  ;;  %v407_v53 = vrot.slane %v399_v50, 6  ;;  %v409_v54 = vrot.slane %v400_v51, 5  ;;  %v588_v55 = vld [vmem:[#allocation2 + $0xe] sm:$0x1]  ;;  %v589_v56 = vld [vmem:[#allocation2 + $0x1e] sm:$0x1]  ;;  %698 = vmatmul.msk.f32.vlgmr.msra.gmra.mxu3 %vm67_vm3, %v484_v48 }
  0x26   :  { %v374_v57 = vsel %vm65_vm2, %v373_v45, %v372_v0  ;;  %v406_v58 = vsel %vm59_vm0, %v405_v52, %v397_v46  ;;  %v590_v59 = vld [vmem:[#allocation2 + $0x2e] sm:$0x1]  ;;  %v591_v60 = vld [vmem:[#allocation2 + $0x3e] sm:$0x1]  ;;  %v596_v61 = vrot.slane %v589_v56, 7 }
  0x27   :  { %v408_v62 = vsel %vm62_vm1, %v407_v53, %v406_v58  ;;  %v598_v63 = vrot.slane %v590_v59, 6  ;;  %v600_v2 = vrot.slane %v591_v60, 5  ;;  %v625_v1 = vld [vmem:[#allocation2 + $0xf] sm:$0x1]  ;;  %v626_v3 = vld [vmem:[#allocation2 + $0x1f] sm:$0x1]  ;;  %695 = vmatmul.msk.f32.vlgmr.msra.gmra.mxu0 %vm67_vm3, %v374_v57 }
  0x28   :  { %v410_v4 = vsel %vm65_vm2, %v409_v54, %v408_v62  ;;  %v597_v5 = vsel %vm59_vm0, %v596_v61, %v588_v55  ;;  %v627_v6 = vld [vmem:[#allocation2 + $0x2f] sm:$0x1]  ;;  %v628_v7 = vld [vmem:[#allocation2 + $0x3f] sm:$0x1]  ;;  %v633_v8 = vrot.slane %v626_v3, 7 }
  0x29   :  { %696 = vmatmul.msk.f32.vlgmr.msra.gmra.mxu1 %vm67_vm3, %v410_v4  ;;  %v599_v9 = vsel %vm62_vm1, %v598_v63, %v597_v5  ;;  %v635_v10 = vrot.slane %v627_v6, 6  ;;  %v637_v11 = vrot.slane %v628_v7, 5  ;;  %v515_v12 = vld [vmem:[#allocation2 + $0xc] sm:$0x1]  ;;  %v516_v13 = vld [vmem:[#allocation2 + $0x1c] sm:$0x1] }
  0x2a   :  { %v601_v14 = vsel %vm65_vm2, %v600_v2, %v599_v9  ;;  %v634_v15 = vsel %vm59_vm0, %v633_v8, %v625_v1  ;;  %v517_v16 = vld [vmem:[#allocation2 + $0x2c] sm:$0x1]  ;;  %v518_v17 = vld [vmem:[#allocation2 + $0x3c] sm:$0x1]  ;;  %v523_v18 = vrot.slane %v516_v13, 7 }
  0x2b   :  { %v636_v19 = vsel %vm62_vm1, %v635_v10, %v634_v15  ;;  %v525_v20 = vrot.slane %v517_v16, 6  ;;  %v527_v21 = vrot.slane %v518_v17, 5  ;;  %v551_v22 = vld [vmem:[#allocation2 + $0xd] sm:$0x1]  ;;  %v552_v23 = vld [vmem:[#allocation2 + $0x1d] sm:$0x1]  ;;  %701 = vmatmul.msk.f32.vlgmr.msrb.gmra.mxu2 %vm67_vm3, %v601_v14 }
  0x2c   :  { %v638_v24 = vsel %vm65_vm2, %v637_v11, %v636_v19  ;;  %v524_v25 = vsel %vm59_vm0, %v523_v18, %v515_v12  ;;  %v553_v26 = vld [vmem:[#allocation2 + $0x2d] sm:$0x1]  ;;  %v554_v27 = vld [vmem:[#allocation2 + $0x3d] sm:$0x1]  ;;  %v559_v28 = vrot.slane %v552_v23, 7 }
  0x2d   :  { %v526_v29 = vsel %vm62_vm1, %v525_v20, %v524_v25  ;;  %v561_v30 = vrot.slane %v553_v26, 6  ;;  %v563_v31 = vrot.slane %v554_v27, 5  ;;  %702 = vmatmul.msk.f32.vlgmr.msrb.gmra.mxu3 %vm67_vm3, %v638_v24  ;;  %v711_v42 = vld [vmem:[%s932_s2] ss:$0 sm:$0xff]  ;;  %s795_s2 = smov 64  }
  0x2e   :  { %v528_v32 = vsel %vm65_vm2, %v527_v21, %v526_v29  ;;  %v560_v33 = vsel %vm59_vm0, %v559_v28, %v551_v22 }
  0x2f   :  { %v562_v34 = vsel %vm62_vm1, %v561_v30, %v560_v33  ;;  %699 = vmatmul.msk.f32.vlgmr.msrb.gmra.mxu0 %vm67_vm3, %v528_v32 }
  0x30   :  { %v564_v35 = vsel %vm65_vm2, %v563_v31, %v562_v34 }
  0x31   :  { %700 = vmatmul.msk.f32.vlgmr.msrb.gmra.mxu1 %vm67_vm3, %v564_v35 }
  0x94   :  { %v87_v36 = vpop.f32.mrf.mxu0 }
  0x96   :  { %v123_v37 = vpop.f32.mrf.mxu1  ;;  %v160_v39 = vpop.f32.mrf.mxu2 }
  0x97   :  { %v126_v38 = vmax.f32 %v87_v36, %v123_v37 }
  0x98   :  { %v197_v41 = vpop.f32.mrf.mxu3 }
  0x99   :  { %v163_v40 = vmax.f32 %v126_v38, %v160_v39 }
  0x9b   :  { %v200_v43 = vmax.f32 %v163_v40, %v197_v41 }
  0x9c   :  { %v240_v45 = vpop.f32.mrf.mxu0 }
  0x9d   :  { %v204_v44 = vadd.f32 %v711_v42, %v200_v43 }
  0x9e   :  { %v276_v46 = vpop.f32.mrf.mxu1  ;;  %v313_v48 = vpop.f32.mrf.mxu2 }
  0x9f   :  { %206 = vst.msk [vmem:[#allocation7] sm:$0xf] %vm205_vm4, %v204_v44  ;;  %v279_v47 = vmax.f32 %v240_v45, %v276_v46 }
  0xa0   :  { %v350_v50 = vpop.f32.mrf.mxu3 }
  0xa1   :  { %v316_v49 = vmax.f32 %v279_v47, %v313_v48 }
  0xa3   :  { %v353_v51 = vmax.f32 %v316_v49, %v350_v50 }
  0xa4   :  { %v394_v52 = vpop.f32.mrf.mxu0 }
  0xa5   :  { %v354_v0 = vadd.f32 %v711_v42, %v353_v51 }
  0xa6   :  { %v430_v53 = vpop.f32.mrf.mxu1  ;;  %v467_v55 = vpop.f32.mrf.mxu2 }
  0xa7   :  { %v433_v54 = vmax.f32 %v394_v52, %v430_v53  ;;  %356 = vrot.lane.b32.xlu0 %v354_v0, %s794_s24 }
  0xa8   :  { %v504_v57 = vpop.f32.mrf.mxu3 }
  0xa9   :  { %v470_v56 = vmax.f32 %v433_v54, %v467_v55 }
  0xab   :  { %v507_v58 = vmax.f32 %v470_v56, %v504_v57 }
  0xac   :  { %v548_v60 = vpop.f32.mrf.mxu0 }
  0xad   :  { %v508_v59 = vadd.f32 %v711_v42, %v507_v58 }
  0xae   :  { %v584_v61 = vpop.f32.mrf.mxu1  ;;  %v621_v63 = vpop.f32.mrf.mxu2 }
  0xaf   :  { %v587_v62 = vmax.f32 %v548_v60, %v584_v61  ;;  %510 = vrot.lane.b32.xlu0 %v508_v59, %s795_s2 }
  0xb0   :  { %v658_v1 = vpop.f32.mrf.mxu3 }
  0xb1   :  { %v624_v2 = vmax.f32 %v587_v62, %v621_v63 }
  0xb3   :  { %v661_v3 = vmax.f32 %v624_v2, %v658_v1 }
  0xb5   :  { %v662_v4 = vadd.f32 %v711_v42, %v661_v3 }
  0xb7   :  { %664 = vrot.lane.b32.xlu1 %v662_v4, %s796_s25 }
 0x119   :  { %v357_v5 = vpop.permute.xlu0 %356 }
 0x11a   :  { %360 = vst.msk [vmem:[#allocation7] sm:$0xf] %vm359_vm5, %v357_v5 }
 0x121   :  { %v511_v6 = vpop.permute.xlu0 %510 }
 0x122   :  { %514 = vst.msk [vmem:[#allocation7] sm:$0xf] %vm513_vm6, %v511_v6 }
 0x129   :  { %v665_v7 = vpop.permute.xlu1 %664 }
 0x12a   :  { %668 = vst.msk [vmem:[#allocation7] sm:$0xf] %vm667_vm7, %v665_v7 }
 0x12b   :  { %679 = dma.vmem_to_hbm [thread:$0]  %s675_s27, 64, %s677_s30, [#allocation4]  }
 0x12c   :  { %788 = dma.done.wait [#allocation4], 64  }
 0x12d   :  { %789 = vsyncadd [#allocation4], 4294967232 }
 0x12e   :  { %684 = vsyncpa [#allocation3], 1 }
 0x12f   :  { %685 = vsyncpa [#allocation6], 1 }
 0x130   :  { %686 = vsyncpa [#allocation4], 1 }

</bundles_post_ra>
